<compile_context>
chip_gen: v5e
topology: v5e:2x2
jax: 0.10.0
libtpu: 0.0.40
codegen_flags: <defaults>
</compile_context>

<pallas_src>
import functools

import jax
import jax.numpy as jnp
from jax.experimental import pallas as pl
from jax.experimental.pallas import tpu as pltpu

BN_EPS = 1e-5


# ---------------------------------------------------------------------------
# Kernels
# ---------------------------------------------------------------------------
def _disc_kernel_reduce(x_ref, w1_ref, b1_ref, w2r_ref, b2_ref, out_ref):
    """class_num == 1 path: second 'matmul' is a VPU multiply + lane reduction."""
    # Linear 1 (BN + bias pre-folded into w1'/b1'): bf16 MXU matmul, f32 accum.
    h = jnp.dot(x_ref[...], w1_ref[...], preferred_element_type=jnp.float32)
    h = h + b1_ref[...]                       # (TB, W) f32
    h = jnp.maximum(h, 0.0)                   # ReLU
    # Dropout(0.5): identity in eval mode.

    # Linear 2 with N=1: VPU mul + lane reduction keeps the MXU free.
    logits = jnp.sum(h * w2r_ref[...], axis=-1, keepdims=True) + b2_ref[...]

    # Sigmoid: exp on EUP, approx reciprocal on EUP (free slots next to MXU/VPU).
    out_ref[...] = pl.reciprocal(1.0 + jnp.exp(-logits), approx=True).astype(out_ref.dtype)


def _disc_kernel_matmul(x_ref, w1_ref, b1_ref, w2_ref, b2_ref, out_ref):
    """General class_num path: second layer uses the MXU."""
    h = jnp.dot(x_ref[...], w1_ref[...], preferred_element_type=jnp.float32)
    h = h + b1_ref[...]
    h = jnp.maximum(h, 0.0)
    # Dropout(0.5): identity in eval mode.
    logits = jnp.dot(h.astype(w2_ref.dtype), w2_ref[...],
                     preferred_element_type=jnp.float32) + b2_ref[...]
    out_ref[...] = pl.reciprocal(1.0 + jnp.exp(-logits), approx=True).astype(out_ref.dtype)


# ---------------------------------------------------------------------------
# Wrapper
# ---------------------------------------------------------------------------
@functools.partial(jax.jit, static_argnames=("batch_tile",))
def discriminator_forward(x, params, *, batch_tile=512):
    """x: (B, input_dim) float32.  params: dict of f32 arrays (see init_params)."""
    b, input_dim = x.shape
    width = params["w1"].shape[1]
    class_num = params["w2"].shape[1]

    # ---- Fold eval-mode BatchNorm (and linear-1 bias) into w1'/b1'. ----------
    scale = params["gamma"] * jax.lax.rsqrt(params["running_var"] + BN_EPS)   # (1, W)
    w1f = (params["w1"] * scale).astype(jnp.bfloat16)                         # (D, W) bf16
    b1f = ((params["b1"] - params["running_mean"]) * scale
           + params["beta"]).astype(jnp.float32)                              # (1, W) f32
    b2 = params["b2"].astype(jnp.float32)                                     # (1, C)

    # ---- Batch tiling (pad B up to a multiple of the tile). ------------------
    tb = max(8, min(int(batch_tile), ((b + 7) // 8) * 8))
    tb = (tb // 8) * 8
    b_pad = pl.cdiv(b, tb) * tb
    x_bf16 = x.astype(jnp.bfloat16)
    if b_pad != b:
        x_bf16 = jnp.pad(x_bf16, ((0, b_pad - b), (0, 0)))
    grid = (b_pad // tb,)

    const2d = lambda i: (0, 0)   # weights / biases: same block every grid step

    if class_num == 1:
        kernel = _disc_kernel_reduce
        w2_op = params["w2"].reshape(1, width).astype(jnp.float32)            # (1, W) row
        w2_spec = pl.BlockSpec((1, width), const2d)
    else:
        kernel = _disc_kernel_matmul
        w2_op = params["w2"].astype(jnp.bfloat16)                             # (W, C)
        w2_spec = pl.BlockSpec((width, class_num), const2d)

    out = pl.pallas_call(
        kernel,
        out_shape=jax.ShapeDtypeStruct((b_pad, class_num), jnp.float32),
        grid=grid,
        in_specs=[
            pl.BlockSpec((tb, input_dim), lambda i: (i, 0)),     # x: batch-tiled
            pl.BlockSpec((input_dim, width), const2d),           # w1' (bf16)
            pl.BlockSpec((1, width), const2d),                   # b1' (f32)
            w2_spec,                                             # w2 / w2 row
            pl.BlockSpec((1, class_num), const2d),               # b2
        ],
        out_specs=pl.BlockSpec((tb, class_num), lambda i: (i, 0)),
        compiler_params=pltpu.CompilerParams(
            dimension_semantics=("parallel",),
            vmem_limit_bytes=48 * 1024 * 1024,
        ),
    )(x_bf16, w1f, b1f, w2_op, b2)

    return out[:b]


# ---------------------------------------------------------------------------
# Params + pure-JAX reference
# ---------------------------------------------------------------------------
def init_params(key, input_dim, width, class_num):
    """Mirrors the PyTorch __init__: Linear weights ~ N(0, 0.01), biases = 0,
       BatchNorm1d default gamma=1, beta=0, running_mean=0, running_var=1."""
    k1, k2 = jax.random.split(key, 2)
    w1 = 0.01 * jax.random.normal(k1, (input_dim, width), dtype=jnp.float32)   # (in, out)
    b1 = jnp.zeros((1, width), dtype=jnp.float32)
    w2 = 0.01 * jax.random.normal(k2, (width, class_num), dtype=jnp.float32)   # (in, out)
    b2 = jnp.zeros((1, class_num), dtype=jnp.float32)
    return {
        "w1": w1, "b1": b1,
        "gamma": jnp.ones((1, width), jnp.float32),
        "beta": jnp.zeros((1, width), jnp.float32),
        "running_mean": jnp.zeros((1, width), jnp.float32),
        "running_var": jnp.ones((1, width), jnp.float32),
        "w2": w2, "b2": b2,
    }


def reference_forward(x, params):
    """Pure-JAX f32 reference (eval semantics)."""
    h = x @ params["w1"] + params["b1"]
    h = (h - params["running_mean"]) / jnp.sqrt(params["running_var"] + BN_EPS)
    h = h * params["gamma"] + params["beta"]
    h = jnp.maximum(h, 0.0)
    logits = h @ params["w2"] + params["b2"]
    return jax.nn.sigmoid(logits)


if __name__ == "__main__":
    # Small shapes consistent with the module (scaled down from 2048/1024/1).
    batch, input_dim, width, class_num = 64, 256, 128, 1

    key = jax.random.PRNGKey(0)
    kx, kp = jax.random.split(key)
    x = jax.random.normal(kx, (batch, input_dim), dtype=jnp.float32)
    params = init_params(kp, input_dim, width, class_num)

    # batch_tile=32 -> grid of 2 blocks, exercising the pipelined batch axis.
    out = discriminator_forward(x, params, batch_tile=32)
    out = jax.block_until_ready(out)

    ref = reference_forward(x, params)
    assert out.shape == (batch, class_num), out.shape
    # bf16 matmul + approx reciprocal -> compare at a bf16-appropriate tolerance.
    max_err = jnp.max(jnp.abs(out - ref))
    assert jnp.allclose(out, ref, atol=5e-3, rtol=5e-3), f"max abs err {max_err}"

    print("KERNEL_OK")
</pallas_src>

<mosaic_0001>
module attributes {stable_mosaic.version = 11 : i64} {
  func.func @_disc_kernel_reduce(%arg0: i32, %arg1: memref<32x256xbf16, #tpu.memory_space<vmem>>, %arg2: memref<256x128xbf16, #tpu.memory_space<vmem>>, %arg3: memref<1x128xf32, #tpu.memory_space<vmem>>, %arg4: memref<1x128xf32, #tpu.memory_space<vmem>>, %arg5: memref<1x1xf32, #tpu.memory_space<vmem>>, %arg6: memref<32x1xf32, #tpu.memory_space<vmem>>) attributes {dimension_semantics = [#tpu.dimension_semantics<parallel>], iteration_bounds = array<i64: 2>, scalar_prefetch = 0 : i64, scratch_operands = 0 : i64, tpu.core_type = #tpu.core_type<tc>, window_params = [{transform_indices = @transform_0, window_bounds = array<i64: 32, 256>}, {pipeline_mode = #tpu.pipeline_mode<synchronous>, transform_indices = @transform_1, window_bounds = array<i64: 256, 128>}, {pipeline_mode = #tpu.pipeline_mode<synchronous>, transform_indices = @transform_2, window_bounds = array<i64: 1, 128>}, {pipeline_mode = #tpu.pipeline_mode<synchronous>, transform_indices = @transform_3, window_bounds = array<i64: 1, 128>}, {pipeline_mode = #tpu.pipeline_mode<synchronous>, transform_indices = @transform_4, window_bounds = array<i64: 1, 1>}, {transform_indices = @transform_5, window_bounds = array<i64: 32, 1>}]} {
    %c0 = arith.constant 0 : index
    %c0_0 = arith.constant 0 : index
    %0 = vector.load %arg1[%c0, %c0_0] : memref<32x256xbf16, #tpu.memory_space<vmem>>, vector<32x256xbf16>
    %c0_1 = arith.constant 0 : index
    %c0_2 = arith.constant 0 : index
    %1 = vector.load %arg2[%c0_1, %c0_2] : memref<256x128xbf16, #tpu.memory_space<vmem>>, vector<256x128xbf16>
    %cst = arith.constant dense<0.000000e+00> : vector<32x128xf32>
    %2 = tpu.matmul %0, %1, %cst {dimension_numbers = #tpu.dot_dimension_numbers<[1], [0], [0], [1], [0, 0, 1, 1], [], []>} : vector<32x256xbf16>, vector<256x128xbf16>, vector<32x128xf32> -> vector<32x128xf32>
    %c0_3 = arith.constant 0 : index
    %c0_4 = arith.constant 0 : index
    %3 = vector.load %arg3[%c0_3, %c0_4] : memref<1x128xf32, #tpu.memory_space<vmem>>, vector<1x128xf32>
    %4 = vector.broadcast %3 : vector<1x128xf32> to vector<32x128xf32>
    %5 = arith.addf %2, %4 : vector<32x128xf32>
    %cst_5 = arith.constant 0.000000e+00 : f32
    %6 = vector.broadcast %cst_5 : f32 to vector<32x128xf32>
    %7 = arith.maximumf %5, %6 : vector<32x128xf32>
    %c0_6 = arith.constant 0 : index
    %c0_7 = arith.constant 0 : index
    %8 = vector.load %arg4[%c0_6, %c0_7] : memref<1x128xf32, #tpu.memory_space<vmem>>, vector<1x128xf32>
    %9 = vector.broadcast %8 : vector<1x128xf32> to vector<32x128xf32>
    %10 = arith.mulf %7, %9 : vector<32x128xf32>
    %cst_8 = arith.constant dense<0.000000e+00> : vector<32xf32>
    %11 = vector.multi_reduction <add>, %10, %cst_8 [1] : vector<32x128xf32> to vector<32xf32>
    %12 = vector.shape_cast %11 : vector<32xf32> to vector<32x1xf32>
    %c0_9 = arith.constant 0 : index
    %c0_10 = arith.constant 0 : index
    %13 = vector.load %arg5[%c0_9, %c0_10] : memref<1x1xf32, #tpu.memory_space<vmem>>, vector<1x1xf32>
    %14 = vector.broadcast %13 : vector<1x1xf32> to vector<32x1xf32>
    %15 = arith.addf %12, %14 : vector<32x1xf32>
    %cst_11 = arith.constant 0.000000e+00 : f32
    %16 = vector.broadcast %cst_11 : f32 to vector<32x1xf32>
    %17 = arith.subf %16, %15 : vector<32x1xf32>
    %18 = math.exp %17 : vector<32x1xf32>
    %cst_12 = arith.constant 1.000000e+00 : f32
    %19 = vector.broadcast %cst_12 : f32 to vector<32x1xf32>
    %20 = arith.addf %19, %18 : vector<32x1xf32>
    %21 = tpu.reciprocal %20 {approx = true} : vector<32x1xf32> -> vector<32x1xf32>
    %c0_13 = arith.constant 0 : index
    %c0_14 = arith.constant 0 : index
    %22 = vector.load %arg6[%c0_13, %c0_14] : memref<32x1xf32, #tpu.memory_space<vmem>>, vector<32x1xf32>
    tpu.vector_store %arg6[%c0_13, %c0_14], %21 {strides = array<i32>} : memref<32x1xf32, #tpu.memory_space<vmem>>, vector<32x1xf32>,
    return
  }
  func.func @transform_0(%arg0: i32) -> (i32, i32) {
    %c0_i32 = arith.constant 0 : i32
    %c0_i32_0 = arith.constant 0 : i32
    return %arg0, %c0_i32 : i32, i32
  }
  func.func @transform_1(%arg0: i32) -> (i32, i32) {
    %c0_i32 = arith.constant 0 : i32
    %c0_i32_0 = arith.constant 0 : i32
    %c0_i32_1 = arith.constant 0 : i32
    return %c0_i32, %c0_i32_0 : i32, i32
  }
  func.func @transform_2(%arg0: i32) -> (i32, i32) {
    %c0_i32 = arith.constant 0 : i32
    %c0_i32_0 = arith.constant 0 : i32
    %c0_i32_1 = arith.constant 0 : i32
    return %c0_i32, %c0_i32_0 : i32, i32
  }
  func.func @transform_3(%arg0: i32) -> (i32, i32) {
    %c0_i32 = arith.constant 0 : i32
    %c0_i32_0 = arith.constant 0 : i32
    %c0_i32_1 = arith.constant 0 : i32
    return %c0_i32, %c0_i32_0 : i32, i32
  }
  func.func @transform_4(%arg0: i32) -> (i32, i32) {
    %c0_i32 = arith.constant 0 : i32
    %c0_i32_0 = arith.constant 0 : i32
    %c0_i32_1 = arith.constant 0 : i32
    return %c0_i32, %c0_i32_0 : i32, i32
  }
  func.func @transform_5(%arg0: i32) -> (i32, i32) {
    %c0_i32 = arith.constant 0 : i32
    %c0_i32_0 = arith.constant 0 : i32
    return %arg0, %c0_i32 : i32, i32
  }
}

</mosaic_0001>

<bundles_post_ra>
// kernel: discriminator_forward.1
= control target key start
LH: loop header
LB: loop body
LE: loop exit
PB: predicated region body
PF: predicated region fallthrough
CT: control target
= control target key end

     0   :  { %s733_s20 = smov 0   ;;  %s815_s0 = inlined_call_operand.vmem [shape: bf16[64,256], index: 0, kind: input, shape index: {}]   ;;  %s816_s1 = inlined_call_operand.vmem [shape: bf16[256,128], index: 1, kind: input, shape index: {}]   ;;  %s817_s2 = inlined_call_operand.vmem [shape: f32[1,128], index: 2, kind: input, shape index: {}]   ;;  %s818_s3 = inlined_call_operand.vmem [shape: f32[1,128], index: 3, kind: input, shape index: {}]   ;;  %s819_s4 = inlined_call_operand.<no memory space> [shape: f32[1,1], index: 4, kind: input, shape index: {}]   ;;  %s820_s5 = inlined_call_operand.vmem [shape: f32[64,1], index: 5, kind: output, shape index: {}]  }
   0x1   :  { %v10_v0 = vstv %s819_s4 }
   0x2   :  { %11 = vst [vmem:[#allocation2] sm:$0x1] %v10_v0 }
   0x3 LB: > { %s536_s21 = sadd.s32 4294967295, %s698_s20   ;;  %p540_p0 = scmp.ge.s32.totalorder %s698_s20, 1  ;;  %s698_s20 = sphi %s733_s20, %s17_s20  }
   0x4   : > { %p191_p1 = scmp.lt.s32.totalorder %s698_s20, 3 }
   0x6   : > { %p192_p2 = pnand %p540_p0, %p191_p1 }
   0x7   : > { %s541_s8 = sshll.u32 (!%p192_p2), %s536_s21, 2 }
   0x8   : > { %195 = sbr.rel (%p192_p2) target bundleno = 332 (0x14c), region = 40  ;;  %p221_p3 = scmp.lt.s32.totalorder (!%p192_p2), %s541_s8, 7 }
   0xd   : > { %v640_v1 = vld [vmem:[%s816_s1 + $0x38] sm:$0xff]  ;;  %v639_v3 = vld [vmem:[%s816_s1 + $0x30] sm:$0xff]  ;;  %v638_v5 = vld [vmem:[%s816_s1 + $0x28] sm:$0xff]  ;;  %s822_s8 = smov (!%p221_p3, %s541_s8), 7  ;;  %vm475_vm0 = vcmask 7168  }
   0xe   : > { %v648_v2 = vld [vmem:[%s816_s1 + $0x78] sm:$0xff]  ;;  %389 = vmatpush.bf16.msra.mxu0 %v640_v1  ;;  %649 = vmatpush.bf16.msra.mxu2 %v640_v1  ;;  %v647_v4 = vld [vmem:[%s816_s1 + $0x70] sm:$0xff]  ;;  %v646_v6 = vld [vmem:[%s816_s1 + $0x68] sm:$0xff]  ;;  %s628_s22 = sshll.u32 %s822_s8, 3 }
   0xf   : > { %408 = vmatpush.bf16.msra.mxu1 %v648_v2  ;;  %657 = vmatpush.bf16.msra.mxu3 %v648_v2  ;;  %v637_v7 = vld [vmem:[%s816_s1 + $0x20] sm:$0xff]  ;;  %v636_v9 = vld [vmem:[%s816_s1 + $0x18] sm:$0xff]  ;;  %v635_v11 = vld [vmem:[%s816_s1 + $0x10] sm:$0xff]  ;;  %s225_s26 = scalar_lea.vmem %s815_s0, %s628_s22  ;;  %s231_s15 = scalar_lea.vmem %s820_s5, %s628_s22 }
  0x10   : > { %v645_v8 = vld [vmem:[%s816_s1 + $0x60] sm:$0xff]  ;;  %v644_v10 = vld [vmem:[%s816_s1 + $0x58] sm:$0xff]  ;;  %v643_v12 = vld [vmem:[%s816_s1 + $0x50] sm:$0xff] }
  0x11   : > { %v634_v13 = vld [vmem:[%s816_s1 + $0x8] sm:$0xff]  ;;  %v633_v15 = vld [vmem:[%s816_s1] sm:$0xff]  ;;  %v556_v19 = vld [vmem:[%s225_s26 + $0x10] sm:$0xf] }
  0x12   : > { %390 = vmatpush.bf16.msra.mxu0 %v639_v3  ;;  %650 = vmatpush.bf16.msra.mxu2 %v639_v3  ;;  %v642_v14 = vld [vmem:[%s816_s1 + $0x48] sm:$0xff]  ;;  %v641_v16 = vld [vmem:[%s816_s1 + $0x40] sm:$0xff]  ;;  %v632_v20 = vld [vmem:[%s225_s26 + $0x14] sm:$0xf0] }
  0x13   : > { %409 = vmatpush.bf16.msra.mxu1 %v647_v4  ;;  %658 = vmatpush.bf16.msra.mxu3 %v647_v4  ;;  %v548_v17 = vld [vmem:[%s225_s26] sm:$0xf]  ;;  %v630_v18 = vld [vmem:[%s225_s26 + $0x4] sm:$0xf0]  ;;  %v629_v21 = vld [vmem:[%s225_s26 + $0x4] sm:$0xf]  ;;  %v557_v26 = vor.u32 %v632_v20, %v556_v19 }
  0x14   : > { %v550_v22 = vld [vmem:[%s225_s26 + $0x8] sm:$0xf0]  ;;  %v631_v23 = vld [vmem:[%s225_s26 + $0x14] sm:$0xf]  ;;  %v558_v24 = vld [vmem:[%s225_s26 + $0x18] sm:$0xf0]  ;;  %v549_v25 = vor.u32 %v630_v18, %v548_v17 }
  0x15   : > { %v553_v27 = vor.u32 %v629_v21, %v550_v22  ;;  %v561_v28 = vor.u32 %v631_v23, %v558_v24  ;;  %v673_v29 = vld [vmem:[%s817_s2] ss:$0 sm:$0xff] }
  0x16   : > { %391 = vmatpush.bf16.msra.mxu0 %v638_v5  ;;  %651 = vmatpush.bf16.msra.mxu2 %v638_v5  ;;  %v674_v34 = vld [vmem:[%s818_s3] ss:$0 sm:$0xff] }
  0x17   : > { %410 = vmatpush.bf16.msra.mxu1 %v646_v6  ;;  %659 = vmatpush.bf16.msra.mxu3 %v646_v6  ;;  %v675_v55 = vld [vmem:[#allocation2] ss:$0 sm:$0xff] }
  0x1a   : > { %392 = vmatpush.bf16.msra.mxu0 %v637_v7  ;;  %652 = vmatpush.bf16.msra.mxu2 %v637_v7 }
  0x1b   : > { %411 = vmatpush.bf16.msra.mxu1 %v645_v8  ;;  %660 = vmatpush.bf16.msra.mxu3 %v645_v8 }
  0x1e   : > { %393 = vmatpush.bf16.msra.mxu0 %v636_v9  ;;  %653 = vmatpush.bf16.msra.mxu2 %v636_v9 }
  0x1f   : > { %412 = vmatpush.bf16.msra.mxu1 %v644_v10  ;;  %661 = vmatpush.bf16.msra.mxu3 %v644_v10 }
  0x22   : > { %394 = vmatpush.bf16.msra.mxu0 %v635_v11  ;;  %654 = vmatpush.bf16.msra.mxu2 %v635_v11 }
  0x23   : > { %413 = vmatpush.bf16.msra.mxu1 %v643_v12  ;;  %662 = vmatpush.bf16.msra.mxu3 %v643_v12 }
  0x26   : > { %395 = vmatpush.bf16.msra.mxu0 %v634_v13  ;;  %655 = vmatpush.bf16.msra.mxu2 %v634_v13 }
  0x27   : > { %414 = vmatpush.bf16.msra.mxu1 %v642_v14  ;;  %663 = vmatpush.bf16.msra.mxu3 %v642_v14 }
  0x2a   : > { %396 = vmatpush.bf16.msra.mxu0 %v633_v15  ;;  %656 = vmatpush.bf16.msra.mxu2 %v633_v15 }
  0x2b   : > { %415 = vmatpush.bf16.msra.mxu1 %v641_v16  ;;  %664 = vmatpush.bf16.msra.mxu3 %v641_v16 }
  0x2d   : > { %397 = vmatmul.bf16.vlgmr.msra.gmra.mxu0 %v549_v25  ;;  %402 = vmatmul.bf16.vlgmr.msra.gmra.mxu2 %v557_v26 }
  0x2e   : > { %416 = vmatmul.bf16.vlgmr.msra.gmra.mxu1 %v553_v27  ;;  %421 = vmatmul.bf16.vlgmr.msra.gmra.mxu3 %v561_v28 }
  0xaa   : > { %v398_v30 = vpop.f32.mrf.mxu0 }
  0xab   : > { %v399_v31 = vadd.f32 %v673_v29, %v398_v30  ;;  %v417_v32 = vpop.f32.mrf.mxu1 }
  0xad   : > { %v418_v33 = vadd.f32 %v417_v32, %v399_v31 }
  0xaf   : > { %v427_v35 = vmax.f32 %v418_v33, 0.0 }
  0xb0   : > { %v403_v36 = vpop.f32.mrf.mxu2 }
  0xb1   : > { %v404_v37 = vadd.f32 %v673_v29, %v403_v36  ;;  %v422_v38 = vpop.f32.mrf.mxu3  ;;  %v435_v39 = vmul.f32 %v674_v34, %v427_v35 }
  0xb2   : > { %v400_v40 = vpop.f32.mrf.mxu0 }
  0xb3   : > { %v423_v41 = vadd.f32 %v422_v38, %v404_v37  ;;  %v401_v42 = vadd.f32 %v673_v29, %v400_v40  ;;  %439 = vadd.xlane.f32.xlu0 %v435_v39  ;;  %v419_v43 = vpop.f32.mrf.mxu1 }
  0xb5   : > { %v429_v44 = vmax.f32 %v423_v41, 0.0  ;;  %v420_v45 = vadd.f32 %v419_v43, %v401_v42 }
  0xb7   : > { %v428_v46 = vmax.f32 %v420_v45, 0.0  ;;  %v437_v47 = vmul.f32 %v674_v34, %v429_v44 }
  0xb8   : > { %v405_v48 = vpop.f32.mrf.mxu2 }
  0xb9   : > { %v406_v49 = vadd.f32 %v673_v29, %v405_v48  ;;  %443 = vadd.xlane.f32.xlu1 %v437_v47  ;;  %v436_v50 = vmul.f32 %v674_v34, %v428_v46  ;;  %v424_v51 = vpop.f32.mrf.mxu3 }
  0xbb   : > { %v425_v52 = vadd.f32 %v424_v51, %v406_v49  ;;  %441 = vadd.xlane.f32.xlu0 %v436_v50 }
  0xbd   : > { %v430_v53 = vmax.f32 %v425_v52, 0.0 }
  0xbf   : > { %v438_v54 = vmul.f32 %v674_v34, %v430_v53 }
  0xc1   : > { %445 = vadd.xlane.f32.xlu1 %v438_v54 }
 0x126   : > { %v440_v56 = vpop.xlane.xlu0 %439 }
 0x127   : > { %v451_v57 = vadd.f32 %v675_v55, %v440_v56 }
 0x129   : > { %v455_v58 = vsub.f32 0.0, %v451_v57 }
 0x12b   : > { %v459_v59 = vmul.f32 1.442695, %v455_v58 }
 0x12c   : > { %v444_v60 = vpop.xlane.xlu1 %443 }
 0x12d   : > { %676 = vpow2.f32 %v459_v59  ;;  %v453_v61 = vadd.f32 %v675_v55, %v444_v60 }
 0x12e   : > { %v442_v62 = vpop.xlane.xlu0 %441 }
 0x12f   : > { %v457_v63 = vsub.f32 0.0, %v453_v61  ;;  %v452_v0 = vadd.f32 %v675_v55, %v442_v62 }
 0x131   : > { %v463_v1 = vmul.f32 1.442695, %v457_v63  ;;  %v456_v2 = vsub.f32 0.0, %v452_v0 }
 0x133   : > { %v677_v3 = vpop.eup %676  ;;  %678 = vpow2.f32 %v463_v1  ;;  %v461_v4 = vmul.f32 1.442695, %v456_v2 }
 0x134   : > { %v467_v5 = vadd.f32 1.0, %v677_v3  ;;  %v446_v6 = vpop.xlane.xlu1 %445 }
 0x135   : > { %680 = vpow2.f32 %v461_v4  ;;  %v454_v7 = vadd.f32 %v675_v55, %v446_v6 }
 0x136   : > { %682 = vrcp.f32 %v467_v5 }
 0x137   : > { %v458_v8 = vsub.f32 0.0, %v454_v7 }
 0x139   : > { %v679_v9 = vpop.eup %678  ;;  %v465_v10 = vmul.f32 1.442695, %v458_v8 }
 0x13a   : > { %v469_v12 = vadd.f32 1.0, %v679_v9 }
 0x13b   : > { %v681_v11 = vpop.eup %680  ;;  %684 = vpow2.f32 %v465_v10 }
 0x13c   : > { %v683_v13 = vpop.eup %682  ;;  %v468_v14 = vadd.f32 1.0, %v681_v11 }
 0x13d   : > { %476 = vst.msk [vmem:[%s231_s15] sm:$0xff] %vm475_vm0, %v683_v13 }
 0x13e   : > { %686 = vrcp.f32 %v468_v14 }
 0x13f   : > { %688 = vrcp.f32 %v469_v12 }
 0x141   : > { %v685_v15 = vpop.eup %684 }
 0x142   : > { %v470_v16 = vadd.f32 1.0, %v685_v15 }
 0x144   : > { %v687_v17 = vpop.eup %686  ;;  %690 = vrcp.f32 %v470_v16 }
 0x145   : > { %v689_v18 = vpop.eup %688  ;;  %477 = vst.msk [vmem:[%s231_s15 + $0x8] sm:$0xff] %vm475_vm0, %v687_v17 }
 0x146   : > { %478 = vst.msk [vmem:[%s231_s15 + $0x10] sm:$0xff] %vm475_vm0, %v689_v18 }
 0x14a   : > { %v691_v19 = vpop.eup %690 }
 0x14b   : > { %479 = vst.msk [vmem:[%s231_s15 + $0x18] sm:$0xff] %vm475_vm0, %v691_v19 }
 0x14c PF: > { %s17_s20 = sadd.s32 1, %s698_s20  }
 0x14d   : > { %p14_p4 = scmp.ge.s32.totalorder %s17_s20, 4  }
 0x14f   :  { %16 = sbr.rel (!%p14_p4) target bundleno = 3 (0x3), region = 70 }

</bundles_post_ra>
